<compile_context>
chip_gen: v7x
topology: tpu7x:2x2x1
jax: 0.10.0
libtpu: 0.0.40
codegen_flags: <defaults>
</compile_context>

<pallas_src>
import jax
import jax.numpy as jnp
from jax.experimental import pallas as pl
from jax.experimental.pallas import tpu as pltpu


def _round_up(x, m):
    return (x + m - 1) // m * m


def _net_kernel(x_ref, w1_ref, w23_ref, misc_ref, out_ref):
    """x_ref: (TILE_B, K_pad); w1_ref: (K_pad, U_pad); w23_ref: (2, U_pad, U_pad);
    misc_ref: (5, U_pad) = [b1, b2, b3, w_out_row, [out_bias, 0...]];
    out_ref: (1, 1, TILE_B)."""
    bf16 = jnp.bfloat16

    # Layer 1: bf16 MXU matmul, f32 accumulate, f32 bias + tanh (tanh -> EUP slot).
    h = jnp.tanh(
        jnp.dot(x_ref[...].astype(bf16), w1_ref[...].astype(bf16),
                preferred_element_type=jnp.float32)
        + misc_ref[0:1, :])

    # Layers 2 and 3 (static unroll).
    for l in range(2):
        h = jnp.tanh(
            jnp.dot(h.astype(bf16), w23_ref[l].astype(bf16),
                    preferred_element_type=jnp.float32)
            + misc_ref[l + 1:l + 2, :])

    # Output layer (1 unit): VPU multiply + lane reduction, no 1-wide MXU pass.
    w_out = misc_ref[3:4, :]                                 # (1, U_pad) f32
    y = jnp.sum(h * w_out, axis=-1).reshape(1, -1)           # (1, TILE_B)
    y = y + misc_ref[4:5, 0:1]                               # scalar out-bias
    out_ref[...] = y.reshape(out_ref.shape).astype(out_ref.dtype)


def pack_params(params):
    """Pack the 4 (w, b) pairs into per-layer zero-padded slabs.  Call ONCE and
    reuse the result across forward calls."""
    w1, b1 = params["fc1"]
    w2, b2 = params["fc2"]
    w3, b3 = params["fc3"]
    w4, b4 = params["out"]
    n_in = w1.shape[0]
    u1, u2, u3 = w1.shape[1], w2.shape[1], w3.shape[1]

    k_pad = _round_up(n_in, 128)
    u_pad = _round_up(max(u1, u2, u3), 128)

    w1p = jnp.zeros((k_pad, u_pad), jnp.float32).at[:n_in, :u1].set(w1)

    w23 = jnp.zeros((2, u_pad, u_pad), jnp.float32)
    w23 = w23.at[0, :u1, :u2].set(w2)
    w23 = w23.at[1, :u2, :u3].set(w3)

    misc = jnp.zeros((5, u_pad), jnp.float32)
    misc = misc.at[0, :u1].set(b1.reshape(-1))
    misc = misc.at[1, :u2].set(b2.reshape(-1))
    misc = misc.at[2, :u3].set(b3.reshape(-1))
    misc = misc.at[3, :u3].set(w4[:, 0])          # out weight stored as a row
    misc = misc.at[4, 0].set(b4.reshape(-1)[0])   # out bias (scalar)
    return w1p, w23, misc


def net_forward(x, packed, *, max_tile_b=512):
    """Forward pass of `Net`. x: [B, n_in] f32, packed = pack_params(...) -> [B, 1]."""
    w1p, w23, misc = packed
    B, n_in = x.shape
    k_pad, u_pad = w1p.shape

    # Adaptive batch tile: one tile for small/medium B, 512-row tiles for large B.
    tile_b = _round_up(max(B, 1), 8) if B <= max_tile_b else max_tile_b
    b_pad = _round_up(B, tile_b)
    num_tiles = b_pad // tile_b

    if b_pad == B and k_pad == n_in:
        x_pad = x.astype(jnp.float32)
    else:
        x_pad = jnp.zeros((b_pad, k_pad), jnp.float32).at[:B, :n_in].set(x)

    # Right-size the scoped VMEM limit from the actual buffers (double-buffered x/out,
    # VMEM-resident params, f32 intermediates) plus generous margin.
    param_bytes = (k_pad * u_pad + 2 * u_pad * u_pad + 8 * u_pad) * 4
    tile_bytes = tile_b * (k_pad + 4 * u_pad + 1) * 4
    vmem_limit = min(64 * 1024 * 1024, 4 * (param_bytes + tile_bytes) + (8 << 20))

    grid_spec = pltpu.PrefetchScalarGridSpec(
        num_scalar_prefetch=0,
        grid=(num_tiles,),
        in_specs=[
            # x: one (TILE_B, K_pad) tile per program, double-buffered by Pallas.
            pl.BlockSpec((tile_b, k_pad), lambda i: (i, 0)),
            # per-layer parameter slabs: constant block index -> fetched once,
            # VMEM-resident across the whole grid.
            pl.BlockSpec((k_pad, u_pad), lambda i: (0, 0)),
            pl.BlockSpec((2, u_pad, u_pad), lambda i: (0, 0, 0)),
            pl.BlockSpec((5, u_pad), lambda i: (0, 0)),
        ],
        out_specs=pl.BlockSpec((1, 1, tile_b), lambda i: (i, 0, 0)),
    )

    out = pl.pallas_call(
        _net_kernel,
        out_shape=jax.ShapeDtypeStruct((num_tiles, 1, tile_b), jnp.float32),
        grid_spec=grid_spec,
        compiler_params=pltpu.CompilerParams(
            dimension_semantics=("parallel",),   # batch tiles are independent
            vmem_limit_bytes=vmem_limit,
        ),
    )(x_pad, w1p, w23, misc)

    # (num_tiles, 1, TILE_B) lane-dense slab -> (B, 1)
    return out.reshape(b_pad, 1)[:B]


def init_params(key, n_inputs, n_units=(50, 50, 50)):
    """Deterministic init matching torch.nn.Linear shapes (weights stored as [in, out])."""
    dims = [n_inputs, n_units[0], n_units[1], n_units[2], 1]
    names = ["fc1", "fc2", "fc3", "out"]
    params = {}
    for name, d_in, d_out in zip(names, dims[:-1], dims[1:]):
        key, kw, kb = jax.random.split(key, 3)
        bound = 1.0 / jnp.sqrt(d_in)  # same fan-in uniform bound as torch.nn.Linear
        w = jax.random.uniform(kw, (d_in, d_out), jnp.float32, -bound, bound)
        b = jax.random.uniform(kb, (1, d_out), jnp.float32, -bound, bound)
        params[name] = (w, b)
    return params


def net_forward_ref(x, params):
    """Plain-JAX f32 reference for validation."""
    h = jnp.tanh(x @ params["fc1"][0] + params["fc1"][1])
    h = jnp.tanh(h @ params["fc2"][0] + params["fc2"][1])
    h = jnp.tanh(h @ params["fc3"][0] + params["fc3"][1])
    return h @ params["out"][0] + params["out"][1]


if __name__ == "__main__":
    key = jax.random.PRNGKey(0)
    k_x, k_p = jax.random.split(key)

    B, n_inputs = 8, 16
    n_units = (32, 32, 32)

    x = jax.random.normal(k_x, (B, n_inputs), jnp.float32)
    params = init_params(k_p, n_inputs, n_units)

    packed = pack_params(params)          # packed ONCE, reused for every forward call
    forward = jax.jit(net_forward)

    y = forward(x, packed)
    y = jax.block_until_ready(y)

    y_ref = net_forward_ref(x, params)
    assert y.shape == (B, 1)
    # bf16 MXU operands with f32 accumulation -> slightly looser tolerance vs f32 ref.
    max_err = float(jnp.max(jnp.abs(y - y_ref)))
    assert max_err < 2e-2, max_err

    print("KERNEL_OK")
</pallas_src>

<mosaic_0001>
module attributes {stable_mosaic.version = 11 : i64} {
  func.func @_net_kernel(%arg0: i32, %arg1: memref<8x128xf32, #tpu.memory_space<vmem>>, %arg2: memref<128x128xf32, #tpu.memory_space<vmem>>, %arg3: memref<2x128x128xf32, #tpu.memory_space<vmem>>, %arg4: memref<5x128xf32, #tpu.memory_space<vmem>>, %arg5: memref<1x1x8xf32, #tpu.memory_space<vmem>>) attributes {dimension_semantics = [#tpu.dimension_semantics<parallel>], iteration_bounds = array<i64: 1>, scalar_prefetch = 0 : i64, scratch_operands = 0 : i64, tpu.core_type = #tpu.core_type<tc>, window_params = [{transform_indices = @transform_0, window_bounds = array<i64: 8, 128>}, {pipeline_mode = #tpu.pipeline_mode<synchronous>, transform_indices = @transform_1, window_bounds = array<i64: 128, 128>}, {pipeline_mode = #tpu.pipeline_mode<synchronous>, transform_indices = @transform_2, window_bounds = array<i64: 2, 128, 128>}, {pipeline_mode = #tpu.pipeline_mode<synchronous>, transform_indices = @transform_3, window_bounds = array<i64: 5, 128>}, {transform_indices = @transform_4, window_bounds = array<i64: 1, 1, 8>}]} {
    %c0 = arith.constant 0 : index
    %c0_0 = arith.constant 0 : index
    %0 = vector.load %arg1[%c0, %c0_0] : memref<8x128xf32, #tpu.memory_space<vmem>>, vector<8x128xf32>
    %1 = arith.truncf %0 : vector<8x128xf32> to vector<8x128xbf16>
    %c0_1 = arith.constant 0 : index
    %c0_2 = arith.constant 0 : index
    %2 = vector.load %arg2[%c0_1, %c0_2] : memref<128x128xf32, #tpu.memory_space<vmem>>, vector<128x128xf32>
    %3 = arith.truncf %2 : vector<128x128xf32> to vector<128x128xbf16>
    %cst = arith.constant dense<0.000000e+00> : vector<8x128xf32>
    %4 = tpu.matmul %1, %3, %cst {dimension_numbers = #tpu.dot_dimension_numbers<[1], [0], [0], [1], [0, 0, 1, 1], [], []>} : vector<8x128xbf16>, vector<128x128xbf16>, vector<8x128xf32> -> vector<8x128xf32>
    %c0_3 = arith.constant 0 : index
    %c0_4 = arith.constant 0 : index
    %5 = vector.load %arg4[%c0_3, %c0_4] : memref<5x128xf32, #tpu.memory_space<vmem>>, vector<1x128xf32>
    %6 = vector.broadcast %5 : vector<1x128xf32> to vector<8x128xf32>
    %7 = arith.addf %4, %6 : vector<8x128xf32>
    %8 = math.tanh %7 : vector<8x128xf32>
    %9 = arith.truncf %8 : vector<8x128xf32> to vector<8x128xbf16>
    %c0_5 = arith.constant 0 : index
    %c0_6 = arith.constant 0 : index
    %c0_7 = arith.constant 0 : index
    %10 = vector.load %arg3[%c0_5, %c0_6, %c0_7] : memref<2x128x128xf32, #tpu.memory_space<vmem>>, vector<1x128x128xf32>
    %11 = vector.shape_cast %10 : vector<1x128x128xf32> to vector<128x128xf32>
    %12 = arith.truncf %11 : vector<128x128xf32> to vector<128x128xbf16>
    %cst_8 = arith.constant dense<0.000000e+00> : vector<8x128xf32>
    %13 = tpu.matmul %9, %12, %cst_8 {dimension_numbers = #tpu.dot_dimension_numbers<[1], [0], [0], [1], [0, 0, 1, 1], [], []>} : vector<8x128xbf16>, vector<128x128xbf16>, vector<8x128xf32> -> vector<8x128xf32>
    %c1 = arith.constant 1 : index
    %c0_9 = arith.constant 0 : index
    %14 = vector.load %arg4[%c1, %c0_9] : memref<5x128xf32, #tpu.memory_space<vmem>>, vector<1x128xf32>
    %15 = vector.broadcast %14 : vector<1x128xf32> to vector<8x128xf32>
    %16 = arith.addf %13, %15 : vector<8x128xf32>
    %17 = math.tanh %16 : vector<8x128xf32>
    %18 = arith.truncf %17 : vector<8x128xf32> to vector<8x128xbf16>
    %c1_10 = arith.constant 1 : index
    %c0_11 = arith.constant 0 : index
    %c0_12 = arith.constant 0 : index
    %19 = vector.load %arg3[%c1_10, %c0_11, %c0_12] : memref<2x128x128xf32, #tpu.memory_space<vmem>>, vector<1x128x128xf32>
    %20 = vector.shape_cast %19 : vector<1x128x128xf32> to vector<128x128xf32>
    %21 = arith.truncf %20 : vector<128x128xf32> to vector<128x128xbf16>
    %cst_13 = arith.constant dense<0.000000e+00> : vector<8x128xf32>
    %22 = tpu.matmul %18, %21, %cst_13 {dimension_numbers = #tpu.dot_dimension_numbers<[1], [0], [0], [1], [0, 0, 1, 1], [], []>} : vector<8x128xbf16>, vector<128x128xbf16>, vector<8x128xf32> -> vector<8x128xf32>
    %c2 = arith.constant 2 : index
    %c0_14 = arith.constant 0 : index
    %23 = vector.load %arg4[%c2, %c0_14] : memref<5x128xf32, #tpu.memory_space<vmem>>, vector<1x128xf32>
    %24 = vector.broadcast %23 : vector<1x128xf32> to vector<8x128xf32>
    %25 = arith.addf %22, %24 : vector<8x128xf32>
    %26 = math.tanh %25 : vector<8x128xf32>
    %c3 = arith.constant 3 : index
    %c0_15 = arith.constant 0 : index
    %27 = vector.load %arg4[%c3, %c0_15] : memref<5x128xf32, #tpu.memory_space<vmem>>, vector<1x128xf32>
    %28 = vector.broadcast %27 : vector<1x128xf32> to vector<8x128xf32>
    %29 = arith.mulf %26, %28 : vector<8x128xf32>
    %cst_16 = arith.constant dense<0.000000e+00> : vector<8xf32>
    %30 = vector.multi_reduction <add>, %29, %cst_16 [1] : vector<8x128xf32> to vector<8xf32>
    %31 = vector.shape_cast %30 : vector<8xf32> to vector<1x8xf32>
    %c4 = arith.constant 4 : index
    %c0_17 = arith.constant 0 : index
    %32 = vector.load %arg4[%c4, %c0_17] : memref<5x128xf32, #tpu.memory_space<vmem>>, vector<1x1xf32>
    %33 = vector.broadcast %32 : vector<1x1xf32> to vector<1x8xf32>
    %34 = arith.addf %31, %33 : vector<1x8xf32>
    %35 = vector.shape_cast %34 : vector<1x8xf32> to vector<1x1x8xf32>
    %c0_18 = arith.constant 0 : index
    %c0_19 = arith.constant 0 : index
    %c0_20 = arith.constant 0 : index
    %36 = vector.load %arg5[%c0_18, %c0_19, %c0_20] : memref<1x1x8xf32, #tpu.memory_space<vmem>>, vector<1x1x8xf32>
    tpu.vector_store %arg5[%c0_18, %c0_19, %c0_20], %35 {strides = array<i32>} : memref<1x1x8xf32, #tpu.memory_space<vmem>>, vector<1x1x8xf32>,
    return
  }
  func.func @transform_0(%arg0: i32) -> (i32, i32) {
    %c0_i32 = arith.constant 0 : i32
    %c0_i32_0 = arith.constant 0 : i32
    return %arg0, %c0_i32 : i32, i32
  }
  func.func @transform_1(%arg0: i32) -> (i32, i32) {
    %c0_i32 = arith.constant 0 : i32
    %c0_i32_0 = arith.constant 0 : i32
    %c0_i32_1 = arith.constant 0 : i32
    return %c0_i32, %c0_i32_0 : i32, i32
  }
  func.func @transform_2(%arg0: i32) -> (i32, i32, i32) {
    %c0_i32 = arith.constant 0 : i32
    %c0_i32_0 = arith.constant 0 : i32
    %c0_i32_1 = arith.constant 0 : i32
    %c0_i32_2 = arith.constant 0 : i32
    return %c0_i32, %c0_i32_0, %c0_i32_1 : i32, i32, i32
  }
  func.func @transform_3(%arg0: i32) -> (i32, i32) {
    %c0_i32 = arith.constant 0 : i32
    %c0_i32_0 = arith.constant 0 : i32
    %c0_i32_1 = arith.constant 0 : i32
    return %c0_i32, %c0_i32_0 : i32, i32
  }
  func.func @transform_4(%arg0: i32) -> (i32, i32, i32) {
    %c0_i32 = arith.constant 0 : i32
    %c0_i32_0 = arith.constant 0 : i32
    %c0_i32_1 = arith.constant 0 : i32
    return %arg0, %c0_i32, %c0_i32_0 : i32, i32, i32
  }
}

</mosaic_0001>

<bundles_post_ra>
// kernel: net_forward.1
= control target key start
LH: loop header
LB: loop body
LE: loop exit
PB: predicated region body
PF: predicated region fallthrough
CT: control target
= control target key end

     0   :  { %9 = vsyncpa [#allocation3], 0  ;;  %s606_s0 = inlined_call_operand.vmem [shape: f32[8,128], index: 0, kind: input, shape index: {}]   ;;  %s607_s1 = inlined_call_operand.hbm [shape: f32[128,128], index: 1, kind: input, shape index: {}]   ;;  %s608_s2 = inlined_call_operand.hbm [shape: f32[2,128,128], index: 2, kind: input, shape index: {}]   ;;  %s609_s3 = inlined_call_operand.vmem [shape: f32[5,128], index: 3, kind: input, shape index: {}]   ;;  %s610_s4 = inlined_call_operand.hbm [shape: f32[1,1,8], index: 4, kind: output, shape index: {}]  }
   0x1   :  { %10 = vsyncpa [#allocation6], 0 }
   0x2   :  { %11 = vsyncpa [#allocation4], 0  ;;  %s489_s15 = smov [#allocation2]   ;;  %s417_s19 = scalar_lea.hbm %s607_s1, 2048 }
   0x3   :  { %s19_s16 = sshll.u32 %s489_s15, 4  ;;  %p418_p0 = scmp.ne.s32.totalorder %s607_s1, %s417_s19  ;;  %s20_s16 = int_to_ptr.vmem [resolvable:$true] %s19_s16 }
   0x4   :  { %p421_p1 = scmp.lt.u32.totalorder %s417_s19, %s607_s1 }
   0x6   :  { %p423_p2 = pnand %p421_p1, %p418_p0 }
   0x8   :  { %426 = shalt.err (!%p423_p2)
}
   0x9   :  { %s427_s24 = scalar_lea.vmem %s20_s16, 2048  ;;  %p432_p4 = scmp.lt.s32.totalorder %s20_s16, %s20_s16 }
   0xa   :  { %p428_p3 = scmp.ne.s32.totalorder %s20_s16, %s427_s24  ;;  %p433_p5 = scmp.lt.s32.totalorder %s427_s24, %s427_s24 }
   0xc   :  { %p434_p6 = por %p433_p5, %p432_p4 }
   0xe   :  { %p435_p7 = pnand %p434_p6, %p428_p3 }
  0x10   :  { %438 = shalt.err (!%p435_p7)
}
  0x11   :  { %s490_s25 = smov 128   ;;  %s491_s26 = smov 8  }
  0x12   :  { %25 = dma.hbm_to_vmem [thread:$0]  %s607_s1, 2048, %s20_s16, [#allocation3], %s490_s25, %s490_s25, %s491_s26  }
  0x13   :  { %s492_s29 = smov [#allocation5]   ;;  %s439_s7 = scalar_lea.hbm %s608_s2, 4096 }
  0x14   :  { %s31_s30 = sshll.u32 %s492_s29, 4  ;;  %p440_p8 = scmp.ne.s32.totalorder %s608_s2, %s439_s7  ;;  %s32_s30 = int_to_ptr.vmem [resolvable:$true] %s31_s30 }
  0x15   :  { %p443_p9 = scmp.lt.u32.totalorder %s439_s7, %s608_s2 }
  0x17   :  { %p445_p10 = pnand %p443_p9, %p440_p8 }
  0x19   :  { %448 = shalt.err (!%p445_p10)
}
  0x1a   :  { %s449_s12 = scalar_lea.vmem %s32_s30, 4096  ;;  %p454_p12 = scmp.lt.s32.totalorder %s32_s30, %s32_s30 }
  0x1b   :  { %p450_p11 = scmp.ne.s32.totalorder %s32_s30, %s449_s12  ;;  %p455_p13 = scmp.lt.s32.totalorder %s449_s12, %s449_s12 }
  0x1d   :  { %p456_p0 = por %p455_p13, %p454_p12 }
  0x1f   :  { %p457_p1 = pnand %p456_p0, %p450_p11 }
  0x21   :  { %460 = shalt.err (!%p457_p1)
}
  0x22   :  { %37 = dma.hbm_to_vmem [thread:$0]  %s608_s2, 4096, %s32_s30, [#allocation6], %s490_s25, %s490_s25, %s491_s26  }
  0x23   :  { %483 = dma.done.wait [#allocation3], 2048  }
  0x24   :  { %484 = vsyncadd [#allocation3], 4294965248 }
  0x25   :  { %485 = dma.done.wait [#allocation6], 4096  }
  0x26   :  { %486 = vsyncadd [#allocation6], 4294963200  ;;  %v493_v0 = vmov 0.0   ;;  %vm494_vm0 = vmmov 0   ;;  %v49_v1 = vld [vmem:[#allocation2] sm:$0xff]  ;;  %v50_v2 = vld [vmem:[#allocation2 + $0x8] sm:$0xff] }
  0x27   :  { %341 = vmatprep.subr.bf16.mxu0 %v493_v0  ;;  %357 = vmatprep.mubr.msk.bf16.mxu0 %vm494_vm0, %v493_v0  ;;  %v51_v3 = vld [vmem:[#allocation2 + $0x10] sm:$0xff]  ;;  %v65_v4 = vpack.c.bf16 %v50_v2, %v49_v1  ;;  %v52_v5 = vld [vmem:[#allocation2 + $0x18] sm:$0xff]  ;;  %v53_v7 = vld [vmem:[#allocation2 + $0x20] sm:$0xff]  ;;  %s496_s24 = smov [#allocation7]   ;;  %vm292_vm1 = vcmask 57344  }
  0x28   :  { %361 = vmatprep.subr.bf16.mxu1 %v493_v0  ;;  %377 = vmatprep.mubr.msk.bf16.mxu1 %vm494_vm0, %v493_v0  ;;  %v66_v6 = vpack.c.bf16 %v52_v5, %v51_v3  ;;  %v54_v8 = vld [vmem:[#allocation2 + $0x28] sm:$0xff]  ;;  %v120_v9 = vld [vmem:[#allocation5] sm:$0xff]  ;;  %v122_v11 = vld [vmem:[#allocation5 + $0x10] sm:$0xff]  ;;  %s300_s25 = sshll.u32 %s496_s24, 4  ;;  %s301_s25 = int_to_ptr.vmem [resolvable:$true] %s300_s25 }
  0x29   :  { %342 = vmatpush3.bf16.msra.mxu0 %v65_v4  ;;  %v121_v10 = vld [vmem:[#allocation5 + $0x8] sm:$0xff]  ;;  %v123_v12 = vld [vmem:[#allocation5 + $0x18] sm:$0xff]  ;;  %v67_v13 = vpack.c.bf16 %v54_v8, %v53_v7  ;;  %v55_v15 = vld [vmem:[#allocation2 + $0x30] sm:$0xff]  ;;  %s461_s26 = scalar_lea.vmem %s301_s25, 16  ;;  %p466_p3 = scmp.lt.s32.totalorder %s301_s25, %s301_s25 }
  0x2a   :  { %343 = vmatprep.subr.bf16.mxu0 %v493_v0  ;;  %v136_v14 = vpack.c.bf16 %v121_v10, %v120_v9  ;;  %v56_v16 = vld [vmem:[#allocation2 + $0x38] sm:$0xff]  ;;  %v137_v17 = vpack.c.bf16 %v123_v12, %v122_v11  ;;  %v124_v18 = vld [vmem:[#allocation5 + $0x20] sm:$0xff]  ;;  %v125_v19 = vld [vmem:[#allocation5 + $0x28] sm:$0xff]  ;;  %p462_p2 = scmp.ne.s32.totalorder %s301_s25, %s461_s26 }
  0x2b   :  { %v68_v20 = vpack.c.bf16 %v56_v16, %v55_v15  ;;  %v57_v21 = vld [vmem:[#allocation2 + $0x40] sm:$0xff]  ;;  %v58_v22 = vld [vmem:[#allocation2 + $0x48] sm:$0xff]  ;;  %v138_v23 = vpack.c.bf16 %v125_v19, %v124_v18  ;;  %v126_v24 = vld [vmem:[#allocation5 + $0x30] sm:$0xff] }
  0x2c   :  { %362 = vmatpush3.bf16.msra.mxu1 %v136_v14  ;;  %v127_v25 = vld [vmem:[#allocation5 + $0x38] sm:$0xff]  ;;  %v69_v26 = vpack.c.bf16 %v58_v22, %v57_v21  ;;  %v59_v27 = vld [vmem:[#allocation2 + $0x50] sm:$0xff]  ;;  %v61_v31 = vld [vmem:[#allocation2 + $0x60] sm:$0xff] }
  0x2d   :  { %344 = vmatpush3.bf16.msra.mxu0 %v66_v6  ;;  %363 = vmatprep.subr.bf16.mxu1 %v493_v0  ;;  %v60_v28 = vld [vmem:[#allocation2 + $0x58] sm:$0xff]  ;;  %v139_v29 = vpack.c.bf16 %v127_v25, %v126_v24  ;;  %v62_v32 = vld [vmem:[#allocation2 + $0x68] sm:$0xff]  ;;  %v63_v34 = vld [vmem:[#allocation2 + $0x70] sm:$0xff] }
  0x2e   :  { %345 = vmatprep.subr.bf16.mxu0 %v493_v0  ;;  %v70_v30 = vpack.c.bf16 %v60_v28, %v59_v27  ;;  %v71_v33 = vpack.c.bf16 %v62_v32, %v61_v31  ;;  %v64_v35 = vld [vmem:[#allocation2 + $0x78] sm:$0xff]  ;;  %v47_v37 = vld [vmem:[%s606_s0] sm:$0xff]  ;;  %v129_v40 = vld [vmem:[#allocation5 + $0x48] sm:$0xff]  ;;  %v495_v28 = vmov 0  }
  0x2f   :  { %v72_v36 = vpack.c.bf16 %v64_v35, %v63_v34  ;;  %v48_v38 = vpack.c.bf16 %v47_v37, %v47_v37  ;;  %v128_v39 = vld [vmem:[#allocation5 + $0x40] sm:$0xff]  ;;  %v130_v42 = vld [vmem:[#allocation5 + $0x50] sm:$0xff]  ;;  %v131_v43 = vld [vmem:[#allocation5 + $0x58] sm:$0xff]  ;;  %409 = vset.pattern.permute.xlu0 %v495_v28  ;;  %410 = vset.pattern.permute.xlu1 %v495_v28 }
  0x30   :  { %364 = vmatpush3.bf16.msra.mxu1 %v137_v17  ;;  %v140_v41 = vpack.c.bf16 %v129_v40, %v128_v39  ;;  %v141_v44 = vpack.c.bf16 %v131_v43, %v130_v42  ;;  %v132_v45 = vld [vmem:[#allocation5 + $0x60] sm:$0xff]  ;;  %v133_v46 = vld [vmem:[#allocation5 + $0x68] sm:$0xff]  ;;  %v134_v48 = vld [vmem:[#allocation5 + $0x70] sm:$0xff] }
  0x31   :  { %346 = vmatpush3.bf16.msra.mxu0 %v67_v13  ;;  %365 = vmatprep.subr.bf16.mxu1 %v493_v0  ;;  %v142_v47 = vpack.c.bf16 %v133_v46, %v132_v45  ;;  %v135_v49 = vld [vmem:[#allocation5 + $0x78] sm:$0xff]  ;;  %v192_v51 = vld [vmem:[#allocation5 + $0x80] sm:$0xff]  ;;  %v193_v52 = vld [vmem:[#allocation5 + $0x88] sm:$0xff] }
  0x32   :  { %347 = vmatprep.subr.bf16.mxu0 %v493_v0  ;;  %v143_v50 = vpack.c.bf16 %v135_v49, %v134_v48  ;;  %v194_v53 = vld [vmem:[#allocation5 + $0x90] sm:$0xff]  ;;  %v208_v54 = vpack.c.bf16 %v193_v52, %v192_v51  ;;  %v195_v55 = vld [vmem:[#allocation5 + $0x98] sm:$0xff]  ;;  %v196_v57 = vld [vmem:[#allocation5 + $0xa0] sm:$0xff] }
  0x33   :  { %v209_v56 = vpack.c.bf16 %v195_v55, %v194_v53  ;;  %v197_v58 = vld [vmem:[#allocation5 + $0xa8] sm:$0xff]  ;;  %v198_v60 = vld [vmem:[#allocation5 + $0xb0] sm:$0xff]  ;;  %v199_v61 = vld [vmem:[#allocation5 + $0xb8] sm:$0xff] }
  0x34   :  { %366 = vmatpush3.bf16.msra.mxu1 %v138_v23  ;;  %v210_v59 = vpack.c.bf16 %v197_v58, %v196_v57  ;;  %v211_v62 = vpack.c.bf16 %v199_v61, %v198_v60  ;;  %v310_v63 = vld [vmem:[%s609_s3] ss:$0 sm:$0xff]  ;;  %v201_v9 = vld [vmem:[#allocation5 + $0xc8] sm:$0xff]  ;;  %v202_v11 = vld [vmem:[#allocation5 + $0xd0] sm:$0xff] }
  0x35   :  { %348 = vmatpush3.bf16.msra.mxu0 %v68_v20  ;;  %367 = vmatprep.subr.bf16.mxu1 %v493_v0  ;;  %v200_v8 = vld [vmem:[#allocation5 + $0xc0] sm:$0xff]  ;;  %v203_v12 = vld [vmem:[#allocation5 + $0xd8] sm:$0xff]  ;;  %v205_v15 = vld [vmem:[#allocation5 + $0xe8] sm:$0xff] }
  0x36   :  { %349 = vmatprep.subr.bf16.mxu0 %v493_v0  ;;  %v212_v10 = vpack.c.bf16 %v201_v9, %v200_v8  ;;  %v213_v13 = vpack.c.bf16 %v203_v12, %v202_v11  ;;  %v204_v14 = vld [vmem:[#allocation5 + $0xe0] sm:$0xff]  ;;  %v206_v17 = vld [vmem:[#allocation5 + $0xf0] sm:$0xff]  ;;  %v207_v18 = vld [vmem:[#allocation5 + $0xf8] sm:$0xff] }
  0x37   :  { %v214_v16 = vpack.c.bf16 %v205_v15, %v204_v14  ;;  %v215_v19 = vpack.c.bf16 %v207_v18, %v206_v17  ;;  %v311_v20 = vld [vmem:[%s609_s3 + $0x1] ss:$0 sm:$0xff]  ;;  %v313_v34 = vld [vmem:[%s609_s3 + $0x3] ss:$0 sm:$0xff]  ;;  %v270_v37 = vld [vmem:[%s609_s3 + $0x4] sm:$0x1] }
  0x38   :  { %368 = vmatpush3.bf16.msra.mxu1 %v139_v29 }
  0x39   :  { %350 = vmatpush3.bf16.msra.mxu0 %v69_v26  ;;  %369 = vmatprep.subr.bf16.mxu1 %v493_v0 }
  0x3a   :  { %351 = vmatprep.subr.bf16.mxu0 %v493_v0 }
  0x3c   :  { %370 = vmatpush3.bf16.msra.mxu1 %v140_v41 }
  0x3d   :  { %352 = vmatpush3.bf16.msra.mxu0 %v70_v30  ;;  %371 = vmatprep.subr.bf16.mxu1 %v493_v0 }
  0x3e   :  { %353 = vmatprep.subr.bf16.mxu0 %v493_v0 }
  0x40   :  { %372 = vmatpush3.bf16.msra.mxu1 %v141_v44 }
  0x41   :  { %354 = vmatpush3.bf16.msra.mxu0 %v71_v33  ;;  %373 = vmatprep.subr.bf16.mxu1 %v493_v0 }
  0x42   :  { %355 = vmatprep.subr.bf16.mxu0 %v493_v0 }
  0x44   :  { %374 = vmatpush3.bf16.msra.mxu1 %v142_v47 }
  0x45   :  { %356 = vmatpush3.bf16.msra.mxu0 %v72_v36  ;;  %375 = vmatprep.subr.bf16.mxu1 %v493_v0 }
  0x46   :  { %381 = vmatprep.subr.bf16.mxu0 %v493_v0 }
  0x48   :  { %358 = vmatmul.mubr.bf16.vlgmr.msra.gmra.mrb[0].mxu0 %v48_v38  ;;  %376 = vmatpush3.bf16.msra.mxu1 %v143_v50  ;;  %v275_v38 = vlaneseq }
  0x49   :  { %397 = vmatprep.mubr.msk.bf16.mxu0 %vm494_vm0, %v493_v0  ;;  %382 = vmatpush3.bf16.msra.mxu0 %v208_v54 }
  0x4a   :  { %383 = vmatprep.subr.bf16.mxu0 %v493_v0  ;;  %v276_v39 = vshrl.u32 %v275_v38, 7  ;;  %v286_v40 = vand.u32 127, %v275_v38 }
  0x4c   :  { %v289_v41 = vsub.s32 %v286_v40, %v276_v39  ;;  %v277_v43 = vsub.s32 0, %v276_v39 }
  0x4d   :  { %384 = vmatpush3.bf16.msra.mxu0 %v209_v56 }
  0x4e   :  { %385 = vmatprep.subr.bf16.mxu0 %v493_v0 }
  0x51   :  { %386 = vmatpush3.bf16.msra.mxu0 %v210_v59 }
  0x52   :  { %387 = vmatprep.subr.bf16.mxu0 %v493_v0 }
  0x55   :  { %388 = vmatpush3.bf16.msra.mxu0 %v211_v62 }
  0x56   :  { %389 = vmatprep.subr.bf16.mxu0 %v493_v0 }
  0x59   :  { %390 = vmatpush3.bf16.msra.mxu0 %v212_v10 }
  0x5a   :  { %391 = vmatprep.subr.bf16.mxu0 %v493_v0 }
  0x5d   :  { %392 = vmatpush3.bf16.msra.mxu0 %v213_v13 }
  0x5e   :  { %393 = vmatprep.subr.bf16.mxu0 %v493_v0 }
  0x61   :  { %394 = vmatpush3.bf16.msra.mxu0 %v214_v16 }
  0x62   :  { %395 = vmatprep.subr.bf16.mxu0 %v493_v0  ;;  %v312_v0 = vld [vmem:[%s609_s3 + $0x2] ss:$0 sm:$0xff]  ;;  %s465_s3 = scalar_lea.vmem %s301_s25, 32 }
  0x63   :  { %p467_p4 = scmp.lt.s32.totalorder %s465_s3, %s461_s26 }
  0x65   :  { %396 = vmatpush3.bf16.msra.mxu0 %v215_v19  ;;  %p468_p5 = por %p467_p4, %p466_p3 }
  0x67   :  { %p469_p6 = pnand %p468_p5, %p462_p2 }
 0x11b   :  { %v112_v1 = vpop.f32.mrb[0].mxu0 }
 0x11c   :  { %v113_v2 = vadd.f32 %v310_v63, %v112_v1  ;;  %v359_v3 = vpop.f32.mrb[1].mxu0 }
 0x11d   :  { %v115_v4 = vpop.f32.mrb[2].mxu0 }
 0x11e   :  { %411 = vtanh.f32 %v113_v2  ;;  %v360_v5 = vpop.f32.mrb[3].mxu0 }
 0x128   :  { %v412_v6 = vpop.eup %411 }
 0x129   :  { %v119_v7 = vpack.c.bf16 %v412_v6, %v412_v6 }
 0x12b   :  { %378 = vmatmul.mubr.bf16.vlgmr.msra.gmra.mrb[0].mxu1 %v119_v7 }
 0x1fe   :  { %v183_v21 = vpop.f32.mrb[0].mxu1 }
 0x1ff   :  { %v184_v22 = vadd.f32 %v311_v20, %v183_v21  ;;  %v379_v23 = vpop.f32.mrb[1].mxu1 }
 0x200   :  { %v186_v24 = vpop.f32.mrb[2].mxu1 }
 0x201   :  { %413 = vtanh.f32 %v184_v22  ;;  %v380_v25 = vpop.f32.mrb[3].mxu1 }
 0x20b   :  { %v414_v26 = vpop.eup %413 }
 0x20c   :  { %v190_v27 = vpack.c.bf16 %v414_v26, %v414_v26 }
 0x20e   :  { %398 = vmatmul.mubr.bf16.vlgmr.msra.gmra.mrb[4].mxu0 %v190_v27 }
 0x2e1   :  { %v255_v29 = vpop.f32.mrb[4].mxu0 }
 0x2e2   :  { %v256_v30 = vadd.f32 %v312_v0, %v255_v29  ;;  %v399_v31 = vpop.f32.mrb[5].mxu0 }
 0x2e3   :  { %v258_v32 = vpop.f32.mrb[6].mxu0 }
 0x2e4   :  { %415 = vtanh.f32 %v256_v30  ;;  %v400_v33 = vpop.f32.mrb[7].mxu0 }
 0x2ee   :  { %v416_v35 = vpop.eup %415 }
 0x2ef   :  { %v267_v36 = vmul.f32 %v416_v35, %v313_v34 }
 0x2f1   :  { %268 = vadd.xlane.f32.xlu0 %v267_v36 }
 0x307   :  { %273 = vperm.xlu0 %409, %v270_v37  }
 0x37e   :  { %v269_v42 = vpop.xlane.xlu0 %268 }
 0x386   :  { %v274_v44 = vpop.permute.xlu0 %273 }
 0x387   :  { %v278_v45 = vrot.slane %v274_v44, %v277_v43 }
 0x389   :  { %v280_v46 = vadd.f32 %v278_v45, %v269_v42 }
 0x38b   :  { %283 = vperm.xlu1 %410, %v280_v46  }
 0x40a   :  { %v284_v47 = vpop.permute.xlu1 %283 }
 0x40b   :  { %v290_v48 = vrot.slane %v284_v47, %v289_v41 }
 0x40d   :  { %293 = vst.msk [vmem:[#allocation7] sm:$0x1] %vm292_vm1, %v290_v48 }
 0x40e   :  { %472 = shalt.err (!%p469_p6)
}
 0x40f   :  { %s473_s29 = scalar_lea.hbm %s610_s4, 16 }
 0x410   :  { %p474_p7 = scmp.ne.s32.totalorder %s610_s4, %s473_s29  ;;  %p477_p8 = scmp.lt.u32.totalorder %s473_s29, %s610_s4 }
 0x412   :  { %p479_p9 = pnand %p477_p8, %p474_p7 }
 0x414   :  { %482 = shalt.err (!%p479_p9)
}
 0x415   :  { %303 = dma.vmem_to_hbm [thread:$0]  %s301_s25, 16, %s610_s4, [#allocation4]  }
 0x416   :  { %487 = dma.done.wait [#allocation4], 16  }
 0x417   :  { %488 = vsyncadd [#allocation4], 4294967280 }
 0x418   :  { %307 = vsyncpa [#allocation3], 1 }
 0x419   :  { %308 = vsyncpa [#allocation6], 1 }
 0x41a   :  { %309 = vsyncpa [#allocation4], 1 }

</bundles_post_ra>
